<compile_context>
chip_gen: v7x
topology: tpu7x:2x2x1
jax: 0.10.0
libtpu: 0.0.40
codegen_flags: <defaults>
</compile_context>

<pallas_src>
import functools

import jax
import jax.numpy as jnp
from jax import lax
from jax.experimental import pallas as pl
from jax.experimental.pallas import tpu as pltpu

PAD_IDX = 10003  # nn.Embedding(padding_idx=10003)


def _round_up(x, m):
    return ((x + m - 1) // m) * m


# -----------------------------------------------------------------------------
# Kernel 1: batched embedding row gather (+ padding_idx zeroing).
#           Dropout(0.3) is identity in eval mode -> no op emitted.
# -----------------------------------------------------------------------------
def _embed_gather_block_kernel(ids_ref, table_ref, out_ref, *, rows, pad_idx):
    base = pl.program_id(0) * rows

    @pl.loop(0, rows, unroll=True)
    def _(i):
        tok = ids_ref[base + i]                          # SMEM scalar read
        keep = (tok != pad_idx).astype(jnp.float32)      # zero the padding row
        out_ref[pl.ds(i, 1), :] = table_ref[pl.ds(tok, 1), :] * keep


def _embed_gather_row_kernel(ids_ref, table_ref, out_ref, *, pad_idx):
    # Fallback path (large vocab): one row-gather DMA per grid step.
    tok = ids_ref[pl.program_id(0)]
    keep = (tok != pad_idx).astype(jnp.float32)
    out_ref[...] = table_ref[...] * keep


def _embed_gather(ids_flat, table):
    n = ids_flat.shape[0]
    v, e = table.shape
    # VMEM footprint of the resident table (lanes pad to 128 internally).
    table_vmem_bytes = _round_up(v, 8) * _round_up(e, 128) * 4

    if table_vmem_bytes <= (16 << 20):
        # Fast path: table VMEM-resident, 32 rows gathered per grid step.
        rows = 32 if n % 32 == 0 else 8
        grid_spec = pltpu.PrefetchScalarGridSpec(
            num_scalar_prefetch=1,
            grid=(n // rows,),
            in_specs=[pl.BlockSpec((v, e), lambda i, ids: (0, 0))],   # resident
            out_specs=pl.BlockSpec((rows, e), lambda i, ids: (i, 0)),
        )
        kern = functools.partial(
            _embed_gather_block_kernel, rows=rows, pad_idx=PAD_IDX)
    else:
        # TODO(synk): large-vocab fallback is one (1, E) gather per grid step;
        # could batch 8 Element-gathers per step if this path ever dominates.
        grid_spec = pltpu.PrefetchScalarGridSpec(
            num_scalar_prefetch=1,
            grid=(n,),
            in_specs=[pl.BlockSpec((1, e), lambda i, ids: (ids[i], 0))],
            out_specs=pl.BlockSpec((1, e), lambda i, ids: (i, 0)),
        )
        kern = functools.partial(_embed_gather_row_kernel, pad_idx=PAD_IDX)

    return pl.pallas_call(
        kern,
        grid_spec=grid_spec,
        out_shape=jax.ShapeDtypeStruct((n, e), jnp.float32),
        compiler_params=pltpu.CompilerParams(dimension_semantics=("parallel",)),
    )(ids_flat, table)


# -----------------------------------------------------------------------------
# Kernel 2: fused input projection + serial GRU recurrence.
#           One grid step = tt timesteps: one (tt*Bp, E) x (E, 3Hp) MXU GEMM
#           into a VMEM scratch, then the tt-step recurrence.
# -----------------------------------------------------------------------------
def _gru_kernel(emb_ref, wih_ref, bih_ref, whh_ref, bhh_ref, lens_ref,
                h_ref, gx_ref, *, tt, bp, hp):
    tb = pl.program_id(0)

    @pl.when(tb == 0)
    def _init():
        h_ref[...] = jnp.zeros_like(h_ref)

    # Fused input projection for the whole time block (gx never touches HBM).
    gx_ref[...] = (
        jnp.dot(emb_ref[...], wih_ref[...], preferred_element_type=jnp.float32)
        + bih_ref[...]
    )

    w = whh_ref[...]                                       # (Hp, 3Hp) resident
    bhh = jnp.broadcast_to(bhh_ref[...], (bp, 3 * hp))     # hoisted broadcast
    lens = lens_ref[...]                                   # (Bp, 1) int32
    t0 = tb * tt

    # NOTE: the (Bp, Hp) x (Hp, 3Hp) recurrence matmul is latency-bound, not
    # MXU-throughput-bound; the lever is a bigger effective batch per step.
    def step(i, h):
        r0 = pl.multiple_of(i * bp, bp)
        gx = gx_ref[pl.ds(r0, bp), :]                      # (Bp, 3Hp)
        gh = jnp.dot(h, w, preferred_element_type=jnp.float32) + bhh
        r = jax.nn.sigmoid(gx[:, 0:hp] + gh[:, 0:hp])
        z = jax.nn.sigmoid(gx[:, hp:2 * hp] + gh[:, hp:2 * hp])
        n = jnp.tanh(gx[:, 2 * hp:3 * hp] + r * gh[:, 2 * hp:3 * hp])
        h_new = (1.0 - z) * n + z * h
        # Freeze rows whose sequence already ended (pack_padded final-hidden).
        keep = ((t0 + i) < lens).astype(jnp.float32)       # (Bp, 1)
        return keep * h_new + (1.0 - keep) * h

    h_ref[...] = lax.fori_loop(0, tt, step, h_ref[...], unroll=True)


def _gru_fused(emb_flat, wih_t_p, bih_p, whh_t_p, bhh_p, lens_col, *, tt, bp):
    n, e = emb_flat.shape
    g3 = wih_t_p.shape[1]
    hp = g3 // 3
    assert n % bp == 0
    tp = n // bp
    assert tp % tt == 0
    rows_blk = tt * bp

    # Explicit scoped-VMEM budget (generous margin; <= 32 MiB works on every
    # generation, including v7x's 64 MiB-physical / 32 MiB-default VMEM).
    vmem_bytes = 4 * (
        2 * rows_blk * e            # streamed emb blocks (double-buffered)
        + e * g3 + hp * g3          # resident W_ih^T, W_hh^T
        + 2 * g3 + bp               # biases + lens
        + 2 * bp * hp               # revisited output block
        + rows_blk * g3             # gx scratch
    )
    vmem_limit = int(min(max(2 * vmem_bytes + (4 << 20), 16 << 20), 32 << 20))

    # TODO(synk): for Bp >= 16 on v7x, add a leading "parallel" grid axis over
    # batch halves so each TensorCore runs half the batch.
    return pl.pallas_call(
        functools.partial(_gru_kernel, tt=tt, bp=bp, hp=hp),
        grid=(tp // tt,),
        in_specs=[
            pl.BlockSpec((rows_blk, e), lambda t: (t, 0)),   # streamed emb
            pl.BlockSpec((e, g3), lambda t: (0, 0)),         # W_ih^T resident
            pl.BlockSpec((1, g3), lambda t: (0, 0)),         # b_ih resident
            pl.BlockSpec((hp, g3), lambda t: (0, 0)),        # W_hh^T resident
            pl.BlockSpec((1, g3), lambda t: (0, 0)),         # b_hh resident
            pl.BlockSpec((bp, 1), lambda t: (0, 0)),         # lens resident
        ],
        out_specs=pl.BlockSpec((bp, hp), lambda t: (0, 0)),  # h accumulator
        out_shape=jax.ShapeDtypeStruct((bp, hp), jnp.float32),
        scratch_shapes=[pltpu.VMEM((rows_blk, g3), jnp.float32)],
        compiler_params=pltpu.CompilerParams(
            dimension_semantics=("arbitrary",),
            vmem_limit_bytes=vmem_limit,
        ),
    )(emb_flat, wih_t_p, bih_p, whh_t_p, bhh_p, lens_col)


# -----------------------------------------------------------------------------
# Weight re-packing: (3H, K) -> (Kp, 3Hp); each of the r/z/n gate blocks is
# zero-padded to Hp so the in-kernel gate slices are lane-aligned.
# -----------------------------------------------------------------------------
def _pack_gate_matrix(w, h, hp, kp):
    k = w.shape[1]
    w3 = w.reshape(3, h, k)
    w3 = jnp.pad(w3, ((0, 0), (0, hp - h), (0, kp - k)))
    return jnp.transpose(w3.reshape(3 * hp, kp))               # (Kp, 3Hp)


def _pack_gate_bias(b, h, hp):
    b3 = jnp.pad(b.reshape(3, h), ((0, 0), (0, hp - h)))
    return b3.reshape(1, 3 * hp)


# -----------------------------------------------------------------------------
# Wrapper: BaseEncoder.forward (num_lyr=1, unidirectional) -> (B, 1, H)
# -----------------------------------------------------------------------------
def base_encoder_forward(tokens, x_lens, params, *, tt=16):
    table = params["embedding"]          # (V, E)
    w_ih = params["w_ih"]                # (3H, E)  rows packed [r | z | n]
    w_hh = params["w_hh"]                # (3H, H)
    b_ih = params["b_ih"]                # (3H,)
    b_hh = params["b_hh"]                # (3H,)

    b, t = tokens.shape
    e = table.shape[1]
    h = w_hh.shape[1]

    bp = _round_up(b, 8)                         # sublane multiple (f32)
    tt_eff = max(8, min(tt, _round_up(t, 8)))    # 8 <= tt <= seq need
    tp = _round_up(t, tt_eff)                    # full timestep blocks
    hp = _round_up(h, 128)                       # lane multiple
    # Note: E is NOT padded — full-width blocks are legal and avoid 4x traffic.

    # ---- pad / repack parameters once, in the wrapper (layout plumbing) ----
    table_f = table.astype(jnp.float32)
    wih_t_p = _pack_gate_matrix(w_ih.astype(jnp.float32), h, hp, e)    # (E,3Hp)
    whh_t_p = _pack_gate_matrix(w_hh.astype(jnp.float32), h, hp, hp)   # (Hp,3Hp)
    bih_p = _pack_gate_bias(b_ih.astype(jnp.float32), h, hp)           # (1,3Hp)
    bhh_p = _pack_gate_bias(b_hh.astype(jnp.float32), h, hp)           # (1,3Hp)

    # ---- pad tokens / lengths; time-major flatten for the gather -----------
    tok_p = jnp.full((bp, tp), PAD_IDX, jnp.int32)
    tok_p = tok_p.at[:b, :t].set(tokens.astype(jnp.int32))
    lens_col = (
        jnp.zeros((bp,), jnp.int32).at[:b].set(x_lens.astype(jnp.int32)).reshape(bp, 1)
    )
    ids_flat = jnp.transpose(tok_p).reshape(tp * bp)        # time-major ids

    # ---- 1) batched embedding gather (Dropout(0.3) identity in eval) -------
    # TODO(synk): training-mode stochastic dropout intentionally omitted.
    # TODO(synk): bf16 storage of emb (v6e/v7x bandwidth win) kept off to stay
    #             within the f32 reference tolerance without re-validation.
    emb_flat = _embed_gather(ids_flat, table_f)             # (Tp*Bp, E) f32

    # ---- 2) fused input projection + serial GRU recurrence -----------------
    h_final = _gru_fused(emb_flat, wih_t_p, bih_p, whh_t_p, bhh_p, lens_col,
                         tt=tt_eff, bp=bp)                  # (Bp, Hp) f32

    # Matches x_hid.view(bt_siz, -1, hid_size) for num_lyr=1, unidirectional.
    return h_final[:b, :h].reshape(b, 1, h)


# -----------------------------------------------------------------------------
# Pure-JAX reference (PyTorch GRU gate math + pack_padded final-hidden rule).
# -----------------------------------------------------------------------------
def _reference_forward(tokens, x_lens, params):
    table = params["embedding"]
    w_ih, w_hh = params["w_ih"], params["w_hh"]
    b_ih, b_hh = params["b_ih"], params["b_hh"]
    h = w_hh.shape[1]

    emb = table[tokens]
    emb = jnp.where((tokens == PAD_IDX)[..., None], 0.0, emb)

    def cell(hprev, xs):
        x_t, t = xs
        gx = x_t @ w_ih.T + b_ih
        gh = hprev @ w_hh.T + b_hh
        r = jax.nn.sigmoid(gx[:, :h] + gh[:, :h])
        z = jax.nn.sigmoid(gx[:, h:2 * h] + gh[:, h:2 * h])
        n = jnp.tanh(gx[:, 2 * h:] + r * gh[:, 2 * h:])
        h_new = (1.0 - z) * n + z * hprev
        h_next = jnp.where((t < x_lens)[:, None], h_new, hprev)
        return h_next, None

    bsz, t_len = tokens.shape
    h0 = jnp.zeros((bsz, h), jnp.float32)
    hfin, _ = lax.scan(cell, h0, (jnp.swapaxes(emb, 0, 1), jnp.arange(t_len)))
    return hfin.reshape(bsz, 1, h)


if __name__ == "__main__":
    key = jax.random.PRNGKey(0)
    vocab_size, emb_size, hid_size = 10004, 32, 32      # padding_idx must exist
    bsz, seq_len = 2, 8

    k1, k2, k3, k4, k5, k6 = jax.random.split(key, 6)
    table = 0.1 * jax.random.normal(k1, (vocab_size, emb_size), jnp.float32)
    table = table.at[PAD_IDX].set(0.0)                   # nn.Embedding pad-row init
    params = {
        "embedding": table,
        "w_ih": 0.1 * jax.random.normal(k2, (3 * hid_size, emb_size), jnp.float32),
        "w_hh": 0.1 * jax.random.normal(k3, (3 * hid_size, hid_size), jnp.float32),
        "b_ih": 0.1 * jax.random.normal(k4, (3 * hid_size,), jnp.float32),
        "b_hh": 0.1 * jax.random.normal(k5, (3 * hid_size,), jnp.float32),
    }

    x_lens = jnp.array([8, 5], jnp.int32)                # decreasing, pack-style
    tokens = jax.random.randint(k6, (bsz, seq_len), 0, 10000, jnp.int32)
    pad_mask = jnp.arange(seq_len)[None, :] >= x_lens[:, None]
    tokens = jnp.where(pad_mask, PAD_IDX, tokens)

    out = jax.block_until_ready(base_encoder_forward(tokens, x_lens, params))
    ref = jax.block_until_ready(_reference_forward(tokens, x_lens, params))

    assert out.shape == (bsz, 1, hid_size)
    err = float(jnp.max(jnp.abs(out - ref)))
    assert err < 5e-3, f"max abs error vs reference: {err}"
    print("KERNEL_OK")
</pallas_src>

<mosaic_0001>
module attributes {stable_mosaic.version = 11 : i64} {
  func.func @_embed_gather_block_kernel(%arg0: i32, %arg1: memref<64xi32, #tpu.memory_space<smem>>, %arg2: memref<10004x32xf32, #tpu.memory_space<vmem>>, %arg3: memref<32x32xf32, #tpu.memory_space<vmem>>) attributes {dimension_semantics = [#tpu.dimension_semantics<parallel>], iteration_bounds = array<i64: 2>, scalar_prefetch = 1 : i64, scratch_operands = 0 : i64, tpu.core_type = #tpu.core_type<tc>, window_params = [{pipeline_mode = #tpu.pipeline_mode<synchronous>, transform_indices = @transform_0, window_bounds = array<i64: 10004, 32>}, {transform_indices = @transform_1, window_bounds = array<i64: 32, 32>}]} {
    %c32_i32 = arith.constant 32 : i32
    %0 = arith.muli %arg0, %c32_i32 : i32
    %c0_i32 = arith.constant 0 : i32
    %c1_i32 = arith.constant 1 : i32
    %1 = arith.muli %c0_i32, %c1_i32 : i32
    %c0_i32_0 = arith.constant 0 : i32
    %2 = arith.addi %c0_i32_0, %1 : i32
    %3 = arith.addi %0, %2 : i32
    %4 = arith.index_cast %3 : i32 to index
    %5 = memref.load %arg1[%4] : memref<64xi32, #tpu.memory_space<smem>>
    %c10003_i32 = arith.constant 10003 : i32
    %6 = arith.cmpi ne, %5, %c10003_i32 : i32
    %7 = arith.extui %6 : i1 to i32
    %8 = arith.sitofp %7 : i32 to f32
    %9 = arith.index_cast %5 : i32 to index
    %c0 = arith.constant 0 : index
    %10 = vector.load %arg2[%9, %c0] : memref<10004x32xf32, #tpu.memory_space<vmem>>, vector<1x32xf32>
    %11 = vector.broadcast %8 : f32 to vector<1x32xf32>
    %12 = arith.mulf %10, %11 : vector<1x32xf32>
    %13 = arith.index_cast %2 : i32 to index
    %c0_1 = arith.constant 0 : index
    %14 = vector.load %arg3[%13, %c0_1] : memref<32x32xf32, #tpu.memory_space<vmem>>, vector<1x32xf32>
    tpu.vector_store %arg3[%13, %c0_1], %12 {strides = array<i32>} : memref<32x32xf32, #tpu.memory_space<vmem>>, vector<1x32xf32>,
    %c1_i32_2 = arith.constant 1 : i32
    %c1_i32_3 = arith.constant 1 : i32
    %15 = arith.muli %c1_i32_2, %c1_i32_3 : i32
    %c0_i32_4 = arith.constant 0 : i32
    %16 = arith.addi %c0_i32_4, %15 : i32
    %17 = arith.addi %0, %16 : i32
    %18 = arith.index_cast %17 : i32 to index
    %19 = memref.load %arg1[%18] : memref<64xi32, #tpu.memory_space<smem>>
    %c10003_i32_5 = arith.constant 10003 : i32
    %20 = arith.cmpi ne, %19, %c10003_i32_5 : i32
    %21 = arith.extui %20 : i1 to i32
    %22 = arith.sitofp %21 : i32 to f32
    %23 = arith.index_cast %19 : i32 to index
    %c0_6 = arith.constant 0 : index
    %24 = vector.load %arg2[%23, %c0_6] : memref<10004x32xf32, #tpu.memory_space<vmem>>, vector<1x32xf32>
    %25 = vector.broadcast %22 : f32 to vector<1x32xf32>
    %26 = arith.mulf %24, %25 : vector<1x32xf32>
    %27 = arith.index_cast %16 : i32 to index
    %c0_7 = arith.constant 0 : index
    %28 = vector.load %arg3[%27, %c0_7] : memref<32x32xf32, #tpu.memory_space<vmem>>, vector<1x32xf32>
    tpu.vector_store %arg3[%27, %c0_7], %26 {strides = array<i32>} : memref<32x32xf32, #tpu.memory_space<vmem>>, vector<1x32xf32>,
    %c2_i32 = arith.constant 2 : i32
    %c1_i32_8 = arith.constant 1 : i32
    %29 = arith.muli %c2_i32, %c1_i32_8 : i32
    %c0_i32_9 = arith.constant 0 : i32
    %30 = arith.addi %c0_i32_9, %29 : i32
    %31 = arith.addi %0, %30 : i32
    %32 = arith.index_cast %31 : i32 to index
    %33 = memref.load %arg1[%32] : memref<64xi32, #tpu.memory_space<smem>>
    %c10003_i32_10 = arith.constant 10003 : i32
    %34 = arith.cmpi ne, %33, %c10003_i32_10 : i32
    %35 = arith.extui %34 : i1 to i32
    %36 = arith.sitofp %35 : i32 to f32
    %37 = arith.index_cast %33 : i32 to index
    %c0_11 = arith.constant 0 : index
    %38 = vector.load %arg2[%37, %c0_11] : memref<10004x32xf32, #tpu.memory_space<vmem>>, vector<1x32xf32>
    %39 = vector.broadcast %36 : f32 to vector<1x32xf32>
    %40 = arith.mulf %38, %39 : vector<1x32xf32>
    %41 = arith.index_cast %30 : i32 to index
    %c0_12 = arith.constant 0 : index
    %42 = vector.load %arg3[%41, %c0_12] : memref<32x32xf32, #tpu.memory_space<vmem>>, vector<1x32xf32>
    tpu.vector_store %arg3[%41, %c0_12], %40 {strides = array<i32>} : memref<32x32xf32, #tpu.memory_space<vmem>>, vector<1x32xf32>,
    %c3_i32 = arith.constant 3 : i32
    %c1_i32_13 = arith.constant 1 : i32
    %43 = arith.muli %c3_i32, %c1_i32_13 : i32
    %c0_i32_14 = arith.constant 0 : i32
    %44 = arith.addi %c0_i32_14, %43 : i32
    %45 = arith.addi %0, %44 : i32
    %46 = arith.index_cast %45 : i32 to index
    %47 = memref.load %arg1[%46] : memref<64xi32, #tpu.memory_space<smem>>
    %c10003_i32_15 = arith.constant 10003 : i32
    %48 = arith.cmpi ne, %47, %c10003_i32_15 : i32
    %49 = arith.extui %48 : i1 to i32
    %50 = arith.sitofp %49 : i32 to f32
    %51 = arith.index_cast %47 : i32 to index
    %c0_16 = arith.constant 0 : index
    %52 = vector.load %arg2[%51, %c0_16] : memref<10004x32xf32, #tpu.memory_space<vmem>>, vector<1x32xf32>
    %53 = vector.broadcast %50 : f32 to vector<1x32xf32>
    %54 = arith.mulf %52, %53 : vector<1x32xf32>
    %55 = arith.index_cast %44 : i32 to index
    %c0_17 = arith.constant 0 : index
    %56 = vector.load %arg3[%55, %c0_17] : memref<32x32xf32, #tpu.memory_space<vmem>>, vector<1x32xf32>
    tpu.vector_store %arg3[%55, %c0_17], %54 {strides = array<i32>} : memref<32x32xf32, #tpu.memory_space<vmem>>, vector<1x32xf32>,
    %c4_i32 = arith.constant 4 : i32
    %c1_i32_18 = arith.constant 1 : i32
    %57 = arith.muli %c4_i32, %c1_i32_18 : i32
    %c0_i32_19 = arith.constant 0 : i32
    %58 = arith.addi %c0_i32_19, %57 : i32
    %59 = arith.addi %0, %58 : i32
    %60 = arith.index_cast %59 : i32 to index
    %61 = memref.load %arg1[%60] : memref<64xi32, #tpu.memory_space<smem>>
    %c10003_i32_20 = arith.constant 10003 : i32
    %62 = arith.cmpi ne, %61, %c10003_i32_20 : i32
    %63 = arith.extui %62 : i1 to i32
    %64 = arith.sitofp %63 : i32 to f32
    %65 = arith.index_cast %61 : i32 to index
    %c0_21 = arith.constant 0 : index
    %66 = vector.load %arg2[%65, %c0_21] : memref<10004x32xf32, #tpu.memory_space<vmem>>, vector<1x32xf32>
    %67 = vector.broadcast %64 : f32 to vector<1x32xf32>
    %68 = arith.mulf %66, %67 : vector<1x32xf32>
    %69 = arith.index_cast %58 : i32 to index
    %c0_22 = arith.constant 0 : index
    %70 = vector.load %arg3[%69, %c0_22] : memref<32x32xf32, #tpu.memory_space<vmem>>, vector<1x32xf32>
    tpu.vector_store %arg3[%69, %c0_22], %68 {strides = array<i32>} : memref<32x32xf32, #tpu.memory_space<vmem>>, vector<1x32xf32>,
    %c5_i32 = arith.constant 5 : i32
    %c1_i32_23 = arith.constant 1 : i32
    %71 = arith.muli %c5_i32, %c1_i32_23 : i32
    %c0_i32_24 = arith.constant 0 : i32
    %72 = arith.addi %c0_i32_24, %71 : i32
    %73 = arith.addi %0, %72 : i32
    %74 = arith.index_cast %73 : i32 to index
    %75 = memref.load %arg1[%74] : memref<64xi32, #tpu.memory_space<smem>>
    %c10003_i32_25 = arith.constant 10003 : i32
    %76 = arith.cmpi ne, %75, %c10003_i32_25 : i32
    %77 = arith.extui %76 : i1 to i32
    %78 = arith.sitofp %77 : i32 to f32
    %79 = arith.index_cast %75 : i32 to index
    %c0_26 = arith.constant 0 : index
    %80 = vector.load %arg2[%79, %c0_26] : memref<10004x32xf32, #tpu.memory_space<vmem>>, vector<1x32xf32>
    %81 = vector.broadcast %78 : f32 to vector<1x32xf32>
    %82 = arith.mulf %80, %81 : vector<1x32xf32>
    %83 = arith.index_cast %72 : i32 to index
    %c0_27 = arith.constant 0 : index
    %84 = vector.load %arg3[%83, %c0_27] : memref<32x32xf32, #tpu.memory_space<vmem>>, vector<1x32xf32>
    tpu.vector_store %arg3[%83, %c0_27], %82 {strides = array<i32>} : memref<32x32xf32, #tpu.memory_space<vmem>>, vector<1x32xf32>,
    %c6_i32 = arith.constant 6 : i32
    %c1_i32_28 = arith.constant 1 : i32
    %85 = arith.muli %c6_i32, %c1_i32_28 : i32
    %c0_i32_29 = arith.constant 0 : i32
    %86 = arith.addi %c0_i32_29, %85 : i32
    %87 = arith.addi %0, %86 : i32
    %88 = arith.index_cast %87 : i32 to index
    %89 = memref.load %arg1[%88] : memref<64xi32, #tpu.memory_space<smem>>
    %c10003_i32_30 = arith.constant 10003 : i32
    %90 = arith.cmpi ne, %89, %c10003_i32_30 : i32
    %91 = arith.extui %90 : i1 to i32
    %92 = arith.sitofp %91 : i32 to f32
    %93 = arith.index_cast %89 : i32 to index
    %c0_31 = arith.constant 0 : index
    %94 = vector.load %arg2[%93, %c0_31] : memref<10004x32xf32, #tpu.memory_space<vmem>>, vector<1x32xf32>
    %95 = vector.broadcast %92 : f32 to vector<1x32xf32>
    %96 = arith.mulf %94, %95 : vector<1x32xf32>
    %97 = arith.index_cast %86 : i32 to index
    %c0_32 = arith.constant 0 : index
    %98 = vector.load %arg3[%97, %c0_32] : memref<32x32xf32, #tpu.memory_space<vmem>>, vector<1x32xf32>
    tpu.vector_store %arg3[%97, %c0_32], %96 {strides = array<i32>} : memref<32x32xf32, #tpu.memory_space<vmem>>, vector<1x32xf32>,
    %c7_i32 = arith.constant 7 : i32
    %c1_i32_33 = arith.constant 1 : i32
    %99 = arith.muli %c7_i32, %c1_i32_33 : i32
    %c0_i32_34 = arith.constant 0 : i32
    %100 = arith.addi %c0_i32_34, %99 : i32
    %101 = arith.addi %0, %100 : i32
    %102 = arith.index_cast %101 : i32 to index
    %103 = memref.load %arg1[%102] : memref<64xi32, #tpu.memory_space<smem>>
    %c10003_i32_35 = arith.constant 10003 : i32
    %104 = arith.cmpi ne, %103, %c10003_i32_35 : i32
    %105 = arith.extui %104 : i1 to i32
    %106 = arith.sitofp %105 : i32 to f32
    %107 = arith.index_cast %103 : i32 to index
    %c0_36 = arith.constant 0 : index
    %108 = vector.load %arg2[%107, %c0_36] : memref<10004x32xf32, #tpu.memory_space<vmem>>, vector<1x32xf32>
    %109 = vector.broadcast %106 : f32 to vector<1x32xf32>
    %110 = arith.mulf %108, %109 : vector<1x32xf32>
    %111 = arith.index_cast %100 : i32 to index
    %c0_37 = arith.constant 0 : index
    %112 = vector.load %arg3[%111, %c0_37] : memref<32x32xf32, #tpu.memory_space<vmem>>, vector<1x32xf32>
    tpu.vector_store %arg3[%111, %c0_37], %110 {strides = array<i32>} : memref<32x32xf32, #tpu.memory_space<vmem>>, vector<1x32xf32>,
    %c8_i32 = arith.constant 8 : i32
    %c1_i32_38 = arith.constant 1 : i32
    %113 = arith.muli %c8_i32, %c1_i32_38 : i32
    %c0_i32_39 = arith.constant 0 : i32
    %114 = arith.addi %c0_i32_39, %113 : i32
    %115 = arith.addi %0, %114 : i32
    %116 = arith.index_cast %115 : i32 to index
    %117 = memref.load %arg1[%116] : memref<64xi32, #tpu.memory_space<smem>>
    %c10003_i32_40 = arith.constant 10003 : i32
    %118 = arith.cmpi ne, %117, %c10003_i32_40 : i32
    %119 = arith.extui %118 : i1 to i32
    %120 = arith.sitofp %119 : i32 to f32
    %121 = arith.index_cast %117 : i32 to index
    %c0_41 = arith.constant 0 : index
    %122 = vector.load %arg2[%121, %c0_41] : memref<10004x32xf32, #tpu.memory_space<vmem>>, vector<1x32xf32>
    %123 = vector.broadcast %120 : f32 to vector<1x32xf32>
    %124 = arith.mulf %122, %123 : vector<1x32xf32>
    %125 = arith.index_cast %114 : i32 to index
    %c0_42 = arith.constant 0 : index
    %126 = vector.load %arg3[%125, %c0_42] : memref<32x32xf32, #tpu.memory_space<vmem>>, vector<1x32xf32>
    tpu.vector_store %arg3[%125, %c0_42], %124 {strides = array<i32>} : memref<32x32xf32, #tpu.memory_space<vmem>>, vector<1x32xf32>,
    %c9_i32 = arith.constant 9 : i32
    %c1_i32_43 = arith.constant 1 : i32
    %127 = arith.muli %c9_i32, %c1_i32_43 : i32
    %c0_i32_44 = arith.constant 0 : i32
    %128 = arith.addi %c0_i32_44, %127 : i32
    %129 = arith.addi %0, %128 : i32
    %130 = arith.index_cast %129 : i32 to index
    %131 = memref.load %arg1[%130] : memref<64xi32, #tpu.memory_space<smem>>
    %c10003_i32_45 = arith.constant 10003 : i32
    %132 = arith.cmpi ne, %131, %c10003_i32_45 : i32
    %133 = arith.extui %132 : i1 to i32
    %134 = arith.sitofp %133 : i32 to f32
    %135 = arith.index_cast %131 : i32 to index
    %c0_46 = arith.constant 0 : index
    %136 = vector.load %arg2[%135, %c0_46] : memref<10004x32xf32, #tpu.memory_space<vmem>>, vector<1x32xf32>
    %137 = vector.broadcast %134 : f32 to vector<1x32xf32>
    %138 = arith.mulf %136, %137 : vector<1x32xf32>
    %139 = arith.index_cast %128 : i32 to index
    %c0_47 = arith.constant 0 : index
    %140 = vector.load %arg3[%139, %c0_47] : memref<32x32xf32, #tpu.memory_space<vmem>>, vector<1x32xf32>
    tpu.vector_store %arg3[%139, %c0_47], %138 {strides = array<i32>} : memref<32x32xf32, #tpu.memory_space<vmem>>, vector<1x32xf32>,
    %c10_i32 = arith.constant 10 : i32
    %c1_i32_48 = arith.constant 1 : i32
    %141 = arith.muli %c10_i32, %c1_i32_48 : i32
    %c0_i32_49 = arith.constant 0 : i32
    %142 = arith.addi %c0_i32_49, %141 : i32
    %143 = arith.addi %0, %142 : i32
    %144 = arith.index_cast %143 : i32 to index
    %145 = memref.load %arg1[%144] : memref<64xi32, #tpu.memory_space<smem>>
    %c10003_i32_50 = arith.constant 10003 : i32
    %146 = arith.cmpi ne, %145, %c10003_i32_50 : i32
    %147 = arith.extui %146 : i1 to i32
    %148 = arith.sitofp %147 : i32 to f32
    %149 = arith.index_cast %145 : i32 to index
    %c0_51 = arith.constant 0 : index
    %150 = vector.load %arg2[%149, %c0_51] : memref<10004x32xf32, #tpu.memory_space<vmem>>, vector<1x32xf32>
    %151 = vector.broadcast %148 : f32 to vector<1x32xf32>
    %152 = arith.mulf %150, %151 : vector<1x32xf32>
    %153 = arith.index_cast %142 : i32 to index
    %c0_52 = arith.constant 0 : index
    %154 = vector.load %arg3[%153, %c0_52] : memref<32x32xf32, #tpu.memory_space<vmem>>, vector<1x32xf32>
    tpu.vector_store %arg3[%153, %c0_52], %152 {strides = array<i32>} : memref<32x32xf32, #tpu.memory_space<vmem>>, vector<1x32xf32>,
    %c11_i32 = arith.constant 11 : i32
    %c1_i32_53 = arith.constant 1 : i32
    %155 = arith.muli %c11_i32, %c1_i32_53 : i32
    %c0_i32_54 = arith.constant 0 : i32
    %156 = arith.addi %c0_i32_54, %155 : i32
    %157 = arith.addi %0, %156 : i32
    %158 = arith.index_cast %157 : i32 to index
    %159 = memref.load %arg1[%158] : memref<64xi32, #tpu.memory_space<smem>>
    %c10003_i32_55 = arith.constant 10003 : i32
    %160 = arith.cmpi ne, %159, %c10003_i32_55 : i32
    %161 = arith.extui %160 : i1 to i32
    %162 = arith.sitofp %161 : i32 to f32
    %163 = arith.index_cast %159 : i32 to index
    %c0_56 = arith.constant 0 : index
    %164 = vector.load %arg2[%163, %c0_56] : memref<10004x32xf32, #tpu.memory_space<vmem>>, vector<1x32xf32>
    %165 = vector.broadcast %162 : f32 to vector<1x32xf32>
    %166 = arith.mulf %164, %165 : vector<1x32xf32>
    %167 = arith.index_cast %156 : i32 to index
    %c0_57 = arith.constant 0 : index
    %168 = vector.load %arg3[%167, %c0_57] : memref<32x32xf32, #tpu.memory_space<vmem>>, vector<1x32xf32>
    tpu.vector_store %arg3[%167, %c0_57], %166 {strides = array<i32>} : memref<32x32xf32, #tpu.memory_space<vmem>>, vector<1x32xf32>,
    %c12_i32 = arith.constant 12 : i32
    %c1_i32_58 = arith.constant 1 : i32
    %169 = arith.muli %c12_i32, %c1_i32_58 : i32
    %c0_i32_59 = arith.constant 0 : i32
    %170 = arith.addi %c0_i32_59, %169 : i32
    %171 = arith.addi %0, %170 : i32
    %172 = arith.index_cast %171 : i32 to index
    %173 = memref.load %arg1[%172] : memref<64xi32, #tpu.memory_space<smem>>
    %c10003_i32_60 = arith.constant 10003 : i32
    %174 = arith.cmpi ne, %173, %c10003_i32_60 : i32
    %175 = arith.extui %174 : i1 to i32
    %176 = arith.sitofp %175 : i32 to f32
    %177 = arith.index_cast %173 : i32 to index
    %c0_61 = arith.constant 0 : index
    %178 = vector.load %arg2[%177, %c0_61] : memref<10004x32xf32, #tpu.memory_space<vmem>>, vector<1x32xf32>
    %179 = vector.broadcast %176 : f32 to vector<1x32xf32>
    %180 = arith.mulf %178, %179 : vector<1x32xf32>
    %181 = arith.index_cast %170 : i32 to index
    %c0_62 = arith.constant 0 : index
    %182 = vector.load %arg3[%181, %c0_62] : memref<32x32xf32, #tpu.memory_space<vmem>>, vector<1x32xf32>
    tpu.vector_store %arg3[%181, %c0_62], %180 {strides = array<i32>} : memref<32x32xf32, #tpu.memory_space<vmem>>, vector<1x32xf32>,
    %c13_i32 = arith.constant 13 : i32
    %c1_i32_63 = arith.constant 1 : i32
    %183 = arith.muli %c13_i32, %c1_i32_63 : i32
    %c0_i32_64 = arith.constant 0 : i32
    %184 = arith.addi %c0_i32_64, %183 : i32
    %185 = arith.addi %0, %184 : i32
    %186 = arith.index_cast %185 : i32 to index
    %187 = memref.load %arg1[%186] : memref<64xi32, #tpu.memory_space<smem>>
    %c10003_i32_65 = arith.constant 10003 : i32
    %188 = arith.cmpi ne, %187, %c10003_i32_65 : i32
    %189 = arith.extui %188 : i1 to i32
    %190 = arith.sitofp %189 : i32 to f32
    %191 = arith.index_cast %187 : i32 to index
    %c0_66 = arith.constant 0 : index
    %192 = vector.load %arg2[%191, %c0_66] : memref<10004x32xf32, #tpu.memory_space<vmem>>, vector<1x32xf32>
    %193 = vector.broadcast %190 : f32 to vector<1x32xf32>
    %194 = arith.mulf %192, %193 : vector<1x32xf32>
    %195 = arith.index_cast %184 : i32 to index
    %c0_67 = arith.constant 0 : index
    %196 = vector.load %arg3[%195, %c0_67] : memref<32x32xf32, #tpu.memory_space<vmem>>, vector<1x32xf32>
    tpu.vector_store %arg3[%195, %c0_67], %194 {strides = array<i32>} : memref<32x32xf32, #tpu.memory_space<vmem>>, vector<1x32xf32>,
    %c14_i32 = arith.constant 14 : i32
    %c1_i32_68 = arith.constant 1 : i32
    %197 = arith.muli %c14_i32, %c1_i32_68 : i32
    %c0_i32_69 = arith.constant 0 : i32
    %198 = arith.addi %c0_i32_69, %197 : i32
    %199 = arith.addi %0, %198 : i32
    %200 = arith.index_cast %199 : i32 to index
    %201 = memref.load %arg1[%200] : memref<64xi32, #tpu.memory_space<smem>>
    %c10003_i32_70 = arith.constant 10003 : i32
    %202 = arith.cmpi ne, %201, %c10003_i32_70 : i32
    %203 = arith.extui %202 : i1 to i32
    %204 = arith.sitofp %203 : i32 to f32
    %205 = arith.index_cast %201 : i32 to index
    %c0_71 = arith.constant 0 : index
    %206 = vector.load %arg2[%205, %c0_71] : memref<10004x32xf32, #tpu.memory_space<vmem>>, vector<1x32xf32>
    %207 = vector.broadcast %204 : f32 to vector<1x32xf32>
    %208 = arith.mulf %206, %207 : vector<1x32xf32>
    %209 = arith.index_cast %198 : i32 to index
    %c0_72 = arith.constant 0 : index
    %210 = vector.load %arg3[%209, %c0_72] : memref<32x32xf32, #tpu.memory_space<vmem>>, vector<1x32xf32>
    tpu.vector_store %arg3[%209, %c0_72], %208 {strides = array<i32>} : memref<32x32xf32, #tpu.memory_space<vmem>>, vector<1x32xf32>,
    %c15_i32 = arith.constant 15 : i32
    %c1_i32_73 = arith.constant 1 : i32
    %211 = arith.muli %c15_i32, %c1_i32_73 : i32
    %c0_i32_74 = arith.constant 0 : i32
    %212 = arith.addi %c0_i32_74, %211 : i32
    %213 = arith.addi %0, %212 : i32
    %214 = arith.index_cast %213 : i32 to index
    %215 = memref.load %arg1[%214] : memref<64xi32, #tpu.memory_space<smem>>
    %c10003_i32_75 = arith.constant 10003 : i32
    %216 = arith.cmpi ne, %215, %c10003_i32_75 : i32
    %217 = arith.extui %216 : i1 to i32
    %218 = arith.sitofp %217 : i32 to f32
    %219 = arith.index_cast %215 : i32 to index
    %c0_76 = arith.constant 0 : index
    %220 = vector.load %arg2[%219, %c0_76] : memref<10004x32xf32, #tpu.memory_space<vmem>>, vector<1x32xf32>
    %221 = vector.broadcast %218 : f32 to vector<1x32xf32>
    %222 = arith.mulf %220, %221 : vector<1x32xf32>
    %223 = arith.index_cast %212 : i32 to index
    %c0_77 = arith.constant 0 : index
    %224 = vector.load %arg3[%223, %c0_77] : memref<32x32xf32, #tpu.memory_space<vmem>>, vector<1x32xf32>
    tpu.vector_store %arg3[%223, %c0_77], %222 {strides = array<i32>} : memref<32x32xf32, #tpu.memory_space<vmem>>, vector<1x32xf32>,
    %c16_i32 = arith.constant 16 : i32
    %c1_i32_78 = arith.constant 1 : i32
    %225 = arith.muli %c16_i32, %c1_i32_78 : i32
    %c0_i32_79 = arith.constant 0 : i32
    %226 = arith.addi %c0_i32_79, %225 : i32
    %227 = arith.addi %0, %226 : i32
    %228 = arith.index_cast %227 : i32 to index
    %229 = memref.load %arg1[%228] : memref<64xi32, #tpu.memory_space<smem>>
    %c10003_i32_80 = arith.constant 10003 : i32
    %230 = arith.cmpi ne, %229, %c10003_i32_80 : i32
    %231 = arith.extui %230 : i1 to i32
    %232 = arith.sitofp %231 : i32 to f32
    %233 = arith.index_cast %229 : i32 to index
    %c0_81 = arith.constant 0 : index
    %234 = vector.load %arg2[%233, %c0_81] : memref<10004x32xf32, #tpu.memory_space<vmem>>, vector<1x32xf32>
    %235 = vector.broadcast %232 : f32 to vector<1x32xf32>
    %236 = arith.mulf %234, %235 : vector<1x32xf32>
    %237 = arith.index_cast %226 : i32 to index
    %c0_82 = arith.constant 0 : index
    %238 = vector.load %arg3[%237, %c0_82] : memref<32x32xf32, #tpu.memory_space<vmem>>, vector<1x32xf32>
    tpu.vector_store %arg3[%237, %c0_82], %236 {strides = array<i32>} : memref<32x32xf32, #tpu.memory_space<vmem>>, vector<1x32xf32>,
    %c17_i32 = arith.constant 17 : i32
    %c1_i32_83 = arith.constant 1 : i32
    %239 = arith.muli %c17_i32, %c1_i32_83 : i32
    %c0_i32_84 = arith.constant 0 : i32
    %240 = arith.addi %c0_i32_84, %239 : i32
    %241 = arith.addi %0, %240 : i32
    %242 = arith.index_cast %241 : i32 to index
    %243 = memref.load %arg1[%242] : memref<64xi32, #tpu.memory_space<smem>>
    %c10003_i32_85 = arith.constant 10003 : i32
    %244 = arith.cmpi ne, %243, %c10003_i32_85 : i32
    %245 = arith.extui %244 : i1 to i32
    %246 = arith.sitofp %245 : i32 to f32
    %247 = arith.index_cast %243 : i32 to index
    %c0_86 = arith.constant 0 : index
    %248 = vector.load %arg2[%247, %c0_86] : memref<10004x32xf32, #tpu.memory_space<vmem>>, vector<1x32xf32>
    %249 = vector.broadcast %246 : f32 to vector<1x32xf32>
    %250 = arith.mulf %248, %249 : vector<1x32xf32>
    %251 = arith.index_cast %240 : i32 to index
    %c0_87 = arith.constant 0 : index
    %252 = vector.load %arg3[%251, %c0_87] : memref<32x32xf32, #tpu.memory_space<vmem>>, vector<1x32xf32>
    tpu.vector_store %arg3[%251, %c0_87], %250 {strides = array<i32>} : memref<32x32xf32, #tpu.memory_space<vmem>>, vector<1x32xf32>,
    %c18_i32 = arith.constant 18 : i32
    %c1_i32_88 = arith.constant 1 : i32
    %253 = arith.muli %c18_i32, %c1_i32_88 : i32
    %c0_i32_89 = arith.constant 0 : i32
    %254 = arith.addi %c0_i32_89, %253 : i32
    %255 = arith.addi %0, %254 : i32
    %256 = arith.index_cast %255 : i32 to index
    %257 = memref.load %arg1[%256] : memref<64xi32, #tpu.memory_space<smem>>
    %c10003_i32_90 = arith.constant 10003 : i32
    %258 = arith.cmpi ne, %257, %c10003_i32_90 : i32
    %259 = arith.extui %258 : i1 to i32
    %260 = arith.sitofp %259 : i32 to f32
    %261 = arith.index_cast %257 : i32 to index
    %c0_91 = arith.constant 0 : index
    %262 = vector.load %arg2[%261, %c0_91] : memref<10004x32xf32, #tpu.memory_space<vmem>>, vector<1x32xf32>
    %263 = vector.broadcast %260 : f32 to vector<1x32xf32>
    %264 = arith.mulf %262, %263 : vector<1x32xf32>
    %265 = arith.index_cast %254 : i32 to index
    %c0_92 = arith.constant 0 : index
    %266 = vector.load %arg3[%265, %c0_92] : memref<32x32xf32, #tpu.memory_space<vmem>>, vector<1x32xf32>
    tpu.vector_store %arg3[%265, %c0_92], %264 {strides = array<i32>} : memref<32x32xf32, #tpu.memory_space<vmem>>, vector<1x32xf32>,
    %c19_i32 = arith.constant 19 : i32
    %c1_i32_93 = arith.constant 1 : i32
    %267 = arith.muli %c19_i32, %c1_i32_93 : i32
    %c0_i32_94 = arith.constant 0 : i32
    %268 = arith.addi %c0_i32_94, %267 : i32
    %269 = arith.addi %0, %268 : i32
    %270 = arith.index_cast %269 : i32 to index
    %271 = memref.load %arg1[%270] : memref<64xi32, #tpu.memory_space<smem>>
    %c10003_i32_95 = arith.constant 10003 : i32
    %272 = arith.cmpi ne, %271, %c10003_i32_95 : i32
    %273 = arith.extui %272 : i1 to i32
    %274 = arith.sitofp %273 : i32 to f32
    %275 = arith.index_cast %271 : i32 to index
    %c0_96 = arith.constant 0 : index
    %276 = vector.load %arg2[%275, %c0_96] : memref<10004x32xf32, #tpu.memory_space<vmem>>, vector<1x32xf32>
    %277 = vector.broadcast %274 : f32 to vector<1x32xf32>
    %278 = arith.mulf %276, %277 : vector<1x32xf32>
    %279 = arith.index_cast %268 : i32 to index
    %c0_97 = arith.constant 0 : index
    %280 = vector.load %arg3[%279, %c0_97] : memref<32x32xf32, #tpu.memory_space<vmem>>, vector<1x32xf32>
    tpu.vector_store %arg3[%279, %c0_97], %278 {strides = array<i32>} : memref<32x32xf32, #tpu.memory_space<vmem>>, vector<1x32xf32>,
    %c20_i32 = arith.constant 20 : i32
    %c1_i32_98 = arith.constant 1 : i32
    %281 = arith.muli %c20_i32, %c1_i32_98 : i32
    %c0_i32_99 = arith.constant 0 : i32
    %282 = arith.addi %c0_i32_99, %281 : i32
    %283 = arith.addi %0, %282 : i32
    %284 = arith.index_cast %283 : i32 to index
    %285 = memref.load %arg1[%284] : memref<64xi32, #tpu.memory_space<smem>>
    %c10003_i32_100 = arith.constant 10003 : i32
    %286 = arith.cmpi ne, %285, %c10003_i32_100 : i32
    %287 = arith.extui %286 : i1 to i32
    %288 = arith.sitofp %287 : i32 to f32
    %289 = arith.index_cast %285 : i32 to index
    %c0_101 = arith.constant 0 : index
    %290 = vector.load %arg2[%289, %c0_101] : memref<10004x32xf32, #tpu.memory_space<vmem>>, vector<1x32xf32>
    %291 = vector.broadcast %288 : f32 to vector<1x32xf32>
    %292 = arith.mulf %290, %291 : vector<1x32xf32>
    %293 = arith.index_cast %282 : i32 to index
    %c0_102 = arith.constant 0 : index
    %294 = vector.load %arg3[%293, %c0_102] : memref<32x32xf32, #tpu.memory_space<vmem>>, vector<1x32xf32>
    tpu.vector_store %arg3[%293, %c0_102], %292 {strides = array<i32>} : memref<32x32xf32, #tpu.memory_space<vmem>>, vector<1x32xf32>,
    %c21_i32 = arith.constant 21 : i32
    %c1_i32_103 = arith.constant 1 : i32
    %295 = arith.muli %c21_i32, %c1_i32_103 : i32
    %c0_i32_104 = arith.constant 0 : i32
    %296 = arith.addi %c0_i32_104, %295 : i32
    %297 = arith.addi %0, %296 : i32
    %298 = arith.index_cast %297 : i32 to index
    %299 = memref.load %arg1[%298] : memref<64xi32, #tpu.memory_space<smem>>
    %c10003_i32_105 = arith.constant 10003 : i32
    %300 = arith.cmpi ne, %299, %c10003_i32_105 : i32
    %301 = arith.extui %300 : i1 to i32
    %302 = arith.sitofp %301 : i32 to f32
    %303 = arith.index_cast %299 : i32 to index
    %c0_106 = arith.constant 0 : index
    %304 = vector.load %arg2[%303, %c0_106] : memref<10004x32xf32, #tpu.memory_space<vmem>>, vector<1x32xf32>
    %305 = vector.broadcast %302 : f32 to vector<1x32xf32>
    %306 = arith.mulf %304, %305 : vector<1x32xf32>
    %307 = arith.index_cast %296 : i32 to index
    %c0_107 = arith.constant 0 : index
    %308 = vector.load %arg3[%307, %c0_107] : memref<32x32xf32, #tpu.memory_space<vmem>>, vector<1x32xf32>
    tpu.vector_store %arg3[%307, %c0_107], %306 {strides = array<i32>} : memref<32x32xf32, #tpu.memory_space<vmem>>, vector<1x32xf32>,
    %c22_i32 = arith.constant 22 : i32
    %c1_i32_108 = arith.constant 1 : i32
    %309 = arith.muli %c22_i32, %c1_i32_108 : i32
    %c0_i32_109 = arith.constant 0 : i32
    %310 = arith.addi %c0_i32_109, %309 : i32
    %311 = arith.addi %0, %310 : i32
    %312 = arith.index_cast %311 : i32 to index
    %313 = memref.load %arg1[%312] : memref<64xi32, #tpu.memory_space<smem>>
    %c10003_i32_110 = arith.constant 10003 : i32
    %314 = arith.cmpi ne, %313, %c10003_i32_110 : i32
    %315 = arith.extui %314 : i1 to i32
    %316 = arith.sitofp %315 : i32 to f32
    %317 = arith.index_cast %313 : i32 to index
    %c0_111 = arith.constant 0 : index
    %318 = vector.load %arg2[%317, %c0_111] : memref<10004x32xf32, #tpu.memory_space<vmem>>, vector<1x32xf32>
    %319 = vector.broadcast %316 : f32 to vector<1x32xf32>
    %320 = arith.mulf %318, %319 : vector<1x32xf32>
    %321 = arith.index_cast %310 : i32 to index
    %c0_112 = arith.constant 0 : index
    %322 = vector.load %arg3[%321, %c0_112] : memref<32x32xf32, #tpu.memory_space<vmem>>, vector<1x32xf32>
    tpu.vector_store %arg3[%321, %c0_112], %320 {strides = array<i32>} : memref<32x32xf32, #tpu.memory_space<vmem>>, vector<1x32xf32>,
    %c23_i32 = arith.constant 23 : i32
    %c1_i32_113 = arith.constant 1 : i32
    %323 = arith.muli %c23_i32, %c1_i32_113 : i32
    %c0_i32_114 = arith.constant 0 : i32
    %324 = arith.addi %c0_i32_114, %323 : i32
    %325 = arith.addi %0, %324 : i32
    %326 = arith.index_cast %325 : i32 to index
    %327 = memref.load %arg1[%326] : memref<64xi32, #tpu.memory_space<smem>>
    %c10003_i32_115 = arith.constant 10003 : i32
    %328 = arith.cmpi ne, %327, %c10003_i32_115 : i32
    %329 = arith.extui %328 : i1 to i32
    %330 = arith.sitofp %329 : i32 to f32
    %331 = arith.index_cast %327 : i32 to index
    %c0_116 = arith.constant 0 : index
    %332 = vector.load %arg2[%331, %c0_116] : memref<10004x32xf32, #tpu.memory_space<vmem>>, vector<1x32xf32>
    %333 = vector.broadcast %330 : f32 to vector<1x32xf32>
    %334 = arith.mulf %332, %333 : vector<1x32xf32>
    %335 = arith.index_cast %324 : i32 to index
    %c0_117 = arith.constant 0 : index
    %336 = vector.load %arg3[%335, %c0_117] : memref<32x32xf32, #tpu.memory_space<vmem>>, vector<1x32xf32>
    tpu.vector_store %arg3[%335, %c0_117], %334 {strides = array<i32>} : memref<32x32xf32, #tpu.memory_space<vmem>>, vector<1x32xf32>,
    %c24_i32 = arith.constant 24 : i32
    %c1_i32_118 = arith.constant 1 : i32
    %337 = arith.muli %c24_i32, %c1_i32_118 : i32
    %c0_i32_119 = arith.constant 0 : i32
    %338 = arith.addi %c0_i32_119, %337 : i32
    %339 = arith.addi %0, %338 : i32
    %340 = arith.index_cast %339 : i32 to index
    %341 = memref.load %arg1[%340] : memref<64xi32, #tpu.memory_space<smem>>
    %c10003_i32_120 = arith.constant 10003 : i32
    %342 = arith.cmpi ne, %341, %c10003_i32_120 : i32
    %343 = arith.extui %342 : i1 to i32
    %344 = arith.sitofp %343 : i32 to f32
    %345 = arith.index_cast %341 : i32 to index
    %c0_121 = arith.constant 0 : index
    %346 = vector.load %arg2[%345, %c0_121] : memref<10004x32xf32, #tpu.memory_space<vmem>>, vector<1x32xf32>
    %347 = vector.broadcast %344 : f32 to vector<1x32xf32>
    %348 = arith.mulf %346, %347 : vector<1x32xf32>
    %349 = arith.index_cast %338 : i32 to index
    %c0_122 = arith.constant 0 : index
    %350 = vector.load %arg3[%349, %c0_122] : memref<32x32xf32, #tpu.memory_space<vmem>>, vector<1x32xf32>
    tpu.vector_store %arg3[%349, %c0_122], %348 {strides = array<i32>} : memref<32x32xf32, #tpu.memory_space<vmem>>, vector<1x32xf32>,
    %c25_i32 = arith.constant 25 : i32
    %c1_i32_123 = arith.constant 1 : i32
    %351 = arith.muli %c25_i32, %c1_i32_123 : i32
    %c0_i32_124 = arith.constant 0 : i32
    %352 = arith.addi %c0_i32_124, %351 : i32
    %353 = arith.addi %0, %352 : i32
    %354 = arith.index_cast %353 : i32 to index
    %355 = memref.load %arg1[%354] : memref<64xi32, #tpu.memory_space<smem>>
    %c10003_i32_125 = arith.constant 10003 : i32
    %356 = arith.cmpi ne, %355, %c10003_i32_125 : i32
    %357 = arith.extui %356 : i1 to i32
    %358 = arith.sitofp %357 : i32 to f32
    %359 = arith.index_cast %355 : i32 to index
    %c0_126 = arith.constant 0 : index
    %360 = vector.load %arg2[%359, %c0_126] : memref<10004x32xf32, #tpu.memory_space<vmem>>, vector<1x32xf32>
    %361 = vector.broadcast %358 : f32 to vector<1x32xf32>
    %362 = arith.mulf %360, %361 : vector<1x32xf32>
    %363 = arith.index_cast %352 : i32 to index
    %c0_127 = arith.constant 0 : index
    %364 = vector.load %arg3[%363, %c0_127] : memref<32x32xf32, #tpu.memory_space<vmem>>, vector<1x32xf32>
    tpu.vector_store %arg3[%363, %c0_127], %362 {strides = array<i32>} : memref<32x32xf32, #tpu.memory_space<vmem>>, vector<1x32xf32>,
    %c26_i32 = arith.constant 26 : i32
    %c1_i32_128 = arith.constant 1 : i32
    %365 = arith.muli %c26_i32, %c1_i32_128 : i32
    %c0_i32_129 = arith.constant 0 : i32
    %366 = arith.addi %c0_i32_129, %365 : i32
    %367 = arith.addi %0, %366 : i32
    %368 = arith.index_cast %367 : i32 to index
    %369 = memref.load %arg1[%368] : memref<64xi32, #tpu.memory_space<smem>>
    %c10003_i32_130 = arith.constant 10003 : i32
    %370 = arith.cmpi ne, %369, %c10003_i32_130 : i32
    %371 = arith.extui %370 : i1 to i32
    %372 = arith.sitofp %371 : i32 to f32
    %373 = arith.index_cast %369 : i32 to index
    %c0_131 = arith.constant 0 : index
    %374 = vector.load %arg2[%373, %c0_131] : memref<10004x32xf32, #tpu.memory_space<vmem>>, vector<1x32xf32>
    %375 = vector.broadcast %372 : f32 to vector<1x32xf32>
    %376 = arith.mulf %374, %375 : vector<1x32xf32>
    %377 = arith.index_cast %366 : i32 to index
    %c0_132 = arith.constant 0 : index
    %378 = vector.load %arg3[%377, %c0_132] : memref<32x32xf32, #tpu.memory_space<vmem>>, vector<1x32xf32>
    tpu.vector_store %arg3[%377, %c0_132], %376 {strides = array<i32>} : memref<32x32xf32, #tpu.memory_space<vmem>>, vector<1x32xf32>,
    %c27_i32 = arith.constant 27 : i32
    %c1_i32_133 = arith.constant 1 : i32
    %379 = arith.muli %c27_i32, %c1_i32_133 : i32
    %c0_i32_134 = arith.constant 0 : i32
    %380 = arith.addi %c0_i32_134, %379 : i32
    %381 = arith.addi %0, %380 : i32
    %382 = arith.index_cast %381 : i32 to index
    %383 = memref.load %arg1[%382] : memref<64xi32, #tpu.memory_space<smem>>
    %c10003_i32_135 = arith.constant 10003 : i32
    %384 = arith.cmpi ne, %383, %c10003_i32_135 : i32
    %385 = arith.extui %384 : i1 to i32
    %386 = arith.sitofp %385 : i32 to f32
    %387 = arith.index_cast %383 : i32 to index
    %c0_136 = arith.constant 0 : index
    %388 = vector.load %arg2[%387, %c0_136] : memref<10004x32xf32, #tpu.memory_space<vmem>>, vector<1x32xf32>
    %389 = vector.broadcast %386 : f32 to vector<1x32xf32>
    %390 = arith.mulf %388, %389 : vector<1x32xf32>
    %391 = arith.index_cast %380 : i32 to index
    %c0_137 = arith.constant 0 : index
    %392 = vector.load %arg3[%391, %c0_137] : memref<32x32xf32, #tpu.memory_space<vmem>>, vector<1x32xf32>
    tpu.vector_store %arg3[%391, %c0_137], %390 {strides = array<i32>} : memref<32x32xf32, #tpu.memory_space<vmem>>, vector<1x32xf32>,
    %c28_i32 = arith.constant 28 : i32
    %c1_i32_138 = arith.constant 1 : i32
    %393 = arith.muli %c28_i32, %c1_i32_138 : i32
    %c0_i32_139 = arith.constant 0 : i32
    %394 = arith.addi %c0_i32_139, %393 : i32
    %395 = arith.addi %0, %394 : i32
    %396 = arith.index_cast %395 : i32 to index
    %397 = memref.load %arg1[%396] : memref<64xi32, #tpu.memory_space<smem>>
    %c10003_i32_140 = arith.constant 10003 : i32
    %398 = arith.cmpi ne, %397, %c10003_i32_140 : i32
    %399 = arith.extui %398 : i1 to i32
    %400 = arith.sitofp %399 : i32 to f32
    %401 = arith.index_cast %397 : i32 to index
    %c0_141 = arith.constant 0 : index
    %402 = vector.load %arg2[%401, %c0_141] : memref<10004x32xf32, #tpu.memory_space<vmem>>, vector<1x32xf32>
    %403 = vector.broadcast %400 : f32 to vector<1x32xf32>
    %404 = arith.mulf %402, %403 : vector<1x32xf32>
    %405 = arith.index_cast %394 : i32 to index
    %c0_142 = arith.constant 0 : index
    %406 = vector.load %arg3[%405, %c0_142] : memref<32x32xf32, #tpu.memory_space<vmem>>, vector<1x32xf32>
    tpu.vector_store %arg3[%405, %c0_142], %404 {strides = array<i32>} : memref<32x32xf32, #tpu.memory_space<vmem>>, vector<1x32xf32>,
    %c29_i32 = arith.constant 29 : i32
    %c1_i32_143 = arith.constant 1 : i32
    %407 = arith.muli %c29_i32, %c1_i32_143 : i32
    %c0_i32_144 = arith.constant 0 : i32
    %408 = arith.addi %c0_i32_144, %407 : i32
    %409 = arith.addi %0, %408 : i32
    %410 = arith.index_cast %409 : i32 to index
    %411 = memref.load %arg1[%410] : memref<64xi32, #tpu.memory_space<smem>>
    %c10003_i32_145 = arith.constant 10003 : i32
    %412 = arith.cmpi ne, %411, %c10003_i32_145 : i32
    %413 = arith.extui %412 : i1 to i32
    %414 = arith.sitofp %413 : i32 to f32
    %415 = arith.index_cast %411 : i32 to index
    %c0_146 = arith.constant 0 : index
    %416 = vector.load %arg2[%415, %c0_146] : memref<10004x32xf32, #tpu.memory_space<vmem>>, vector<1x32xf32>
    %417 = vector.broadcast %414 : f32 to vector<1x32xf32>
    %418 = arith.mulf %416, %417 : vector<1x32xf32>
    %419 = arith.index_cast %408 : i32 to index
    %c0_147 = arith.constant 0 : index
    %420 = vector.load %arg3[%419, %c0_147] : memref<32x32xf32, #tpu.memory_space<vmem>>, vector<1x32xf32>
    tpu.vector_store %arg3[%419, %c0_147], %418 {strides = array<i32>} : memref<32x32xf32, #tpu.memory_space<vmem>>, vector<1x32xf32>,
    %c30_i32 = arith.constant 30 : i32
    %c1_i32_148 = arith.constant 1 : i32
    %421 = arith.muli %c30_i32, %c1_i32_148 : i32
    %c0_i32_149 = arith.constant 0 : i32
    %422 = arith.addi %c0_i32_149, %421 : i32
    %423 = arith.addi %0, %422 : i32
    %424 = arith.index_cast %423 : i32 to index
    %425 = memref.load %arg1[%424] : memref<64xi32, #tpu.memory_space<smem>>
    %c10003_i32_150 = arith.constant 10003 : i32
    %426 = arith.cmpi ne, %425, %c10003_i32_150 : i32
    %427 = arith.extui %426 : i1 to i32
    %428 = arith.sitofp %427 : i32 to f32
    %429 = arith.index_cast %425 : i32 to index
    %c0_151 = arith.constant 0 : index
    %430 = vector.load %arg2[%429, %c0_151] : memref<10004x32xf32, #tpu.memory_space<vmem>>, vector<1x32xf32>
    %431 = vector.broadcast %428 : f32 to vector<1x32xf32>
    %432 = arith.mulf %430, %431 : vector<1x32xf32>
    %433 = arith.index_cast %422 : i32 to index
    %c0_152 = arith.constant 0 : index
    %434 = vector.load %arg3[%433, %c0_152] : memref<32x32xf32, #tpu.memory_space<vmem>>, vector<1x32xf32>
    tpu.vector_store %arg3[%433, %c0_152], %432 {strides = array<i32>} : memref<32x32xf32, #tpu.memory_space<vmem>>, vector<1x32xf32>,
    %c31_i32 = arith.constant 31 : i32
    %c1_i32_153 = arith.constant 1 : i32
    %435 = arith.muli %c31_i32, %c1_i32_153 : i32
    %c0_i32_154 = arith.constant 0 : i32
    %436 = arith.addi %c0_i32_154, %435 : i32
    %437 = arith.addi %0, %436 : i32
    %438 = arith.index_cast %437 : i32 to index
    %439 = memref.load %arg1[%438] : memref<64xi32, #tpu.memory_space<smem>>
    %c10003_i32_155 = arith.constant 10003 : i32
    %440 = arith.cmpi ne, %439, %c10003_i32_155 : i32
    %441 = arith.extui %440 : i1 to i32
    %442 = arith.sitofp %441 : i32 to f32
    %443 = arith.index_cast %439 : i32 to index
    %c0_156 = arith.constant 0 : index
    %444 = vector.load %arg2[%443, %c0_156] : memref<10004x32xf32, #tpu.memory_space<vmem>>, vector<1x32xf32>
    %445 = vector.broadcast %442 : f32 to vector<1x32xf32>
    %446 = arith.mulf %444, %445 : vector<1x32xf32>
    %447 = arith.index_cast %436 : i32 to index
    %c0_157 = arith.constant 0 : index
    %448 = vector.load %arg3[%447, %c0_157] : memref<32x32xf32, #tpu.memory_space<vmem>>, vector<1x32xf32>
    tpu.vector_store %arg3[%447, %c0_157], %446 {strides = array<i32>} : memref<32x32xf32, #tpu.memory_space<vmem>>, vector<1x32xf32>,
    %c32_i32_158 = arith.constant 32 : i32
    return
  }
  func.func @transform_0(%arg0: i32, %arg1: memref<64xi32, #tpu.memory_space<smem>>) -> (i32, i32) {
    %c0_i32 = arith.constant 0 : i32
    %c0_i32_0 = arith.constant 0 : i32
    %c0_i32_1 = arith.constant 0 : i32
    return %c0_i32, %c0_i32_0 : i32, i32
  }
  func.func @transform_1(%arg0: i32, %arg1: memref<64xi32, #tpu.memory_space<smem>>) -> (i32, i32) {
    %c0_i32 = arith.constant 0 : i32
    %c0_i32_0 = arith.constant 0 : i32
    return %arg0, %c0_i32 : i32, i32
  }
}

</mosaic_0001>

<bundles_post_ra>
// kernel: tpu_custom_call.1
= control target key start
LH: loop header
LB: loop body
LE: loop exit
PB: predicated region body
PF: predicated region fallthrough
CT: control target
= control target key end

     0   :  { %s843_s0 = inlined_call_operand.vmem [shape: s32[64], index: 0, kind: input, shape index: {}]   ;;  %s844_s1 = inlined_call_operand.vmem [shape: f32[10004,32], index: 1, kind: input, shape index: {}]   ;;  %s845_s2 = inlined_call_operand.vmem [shape: f32[64,32], index: 2, kind: output, shape index: {}]  }
   0x1   :  { %s7_s11 = sshll.u32 %s843_s0, 4  ;;  %s8_s11 = int_to_ptr.vmem [resolvable:$true] %s7_s11 }
   0x2   :  { %s520_s12 = scalar_lea.vmem %s8_s11, 16  ;;  %p525_p1 = scmp.lt.s32.totalorder %s8_s11, %s8_s11 }
   0x3   :  { %p521_p0 = scmp.ne.s32.totalorder %s8_s11, %s520_s12  ;;  %p526_p2 = scmp.lt.s32.totalorder %s520_s12, %s520_s12 }
   0x5   :  { %p527_p3 = por %p526_p2, %p525_p1 }
   0x7   :  { %p528_p4 = pnand %p527_p3, %p521_p0 }
   0x9   :  { %531 = shalt.err (!%p528_p4)  }
   0xa   :  { %s542_s13 = smov [#allocation3]  }
   0xb   :  { %10 = dma.vmem_to_smem %s8_s11, 16, %s542_s13, [#allocation2] }
   0xc   :  { %536 = dma.done.wait [#allocation2], 16 }
   0xd   :  { %537 = vsyncadd [#allocation2], 4294967280 }
   0xe   :  { %12 = sfence }
   0xf   :  { %s561_s14 = smov 0  }
  0x10 LB: > { %s502_s0 = sadd.s32 4294967295, %s540_s14   ;;  %p505_p5 = scmp.ge.s32.totalorder %s540_s14, 1  ;;  %s540_s14 = sphi %s561_s14, %s18_s14  }
  0x11   : > { %p84_p6 = scmp.lt.s32.totalorder %s540_s14, 3 }
  0x13   : > { %p85_p7 = pnand %p505_p5, %p84_p6 }
  0x14   : > { %s506_s15 = sshll.u32 (!%p85_p7), %s502_s0, 2  ;;  %s569_s16 = sshll.u32 (!%p85_p7), %s502_s0, 5  ;;  %vm114_vm0 = vcmask (!%p85_p7), 253952  }
  0x15   : > { %88 = sbr.rel (%p85_p7) target bundleno = 142 (0x8e), region = 24  ;;  %p100_p8 = scmp.lt.s32.totalorder (!%p85_p7), %s506_s15, 7 }
  0x16   : > { %s106_s17 = sld [smem:[#allocation3 + %s569_s16]] (!%p85_p7)  ;;  %s116_s18 = sadd.s32 (!%p85_p7), 1, %s569_s16 }
  0x17   : > { %s126_s19 = sadd.s32 (!%p85_p7), 2, %s569_s16  ;;  %s117_s20 = sld [smem:[#allocation3 + %s116_s18]] (!%p85_p7) }
  0x18   : > { %s127_s21 = sld [smem:[#allocation3 + %s126_s19]] (!%p85_p7)  ;;  %s136_s23 = sadd.s32 (!%p85_p7), 3, %s569_s16 }
  0x19   : > { %s580_s27 = sld [smem:[#allocation3 + %s136_s23]] (!%p85_p7)  ;;  %s146_s3 = sadd.s32 (!%p85_p7), 4, %s569_s16 }
  0x1a   : > { %s156_s4 = sadd.s32 (!%p85_p7), 5, %s569_s16  ;;  %s166_s24 = sadd.s32 (!%p85_p7), 6, %s569_s16 }
  0x1b   : > { %s167_s28 = sld [smem:[#allocation3 + %s166_s24]] (!%p85_p7)  ;;  %s186_s29 = sadd.s32 (!%p85_p7), 8, %s569_s16 }
  0x1c   : > { %s847_s15 = smov (!%p100_p8, %s506_s15), 7  ;;  %p107_p9 = scmp.ne.s32.totalorder %s106_s17, 10003 }
  0x1d   : > { %s507_s22 = sshll.u32 %s847_s15, 3  ;;  %s110_s30 = scalar_lea.vmem %s844_s1, %s106_s17 }
  0x1e   : > { %s578_s26 = scalar_lea.vmem %s845_s2, %s507_s22  ;;  %p118_p10 = scmp.ne.s32.totalorder %s117_s20, 10003  ;;  %v111_v0 = vld [vmem:[%s110_s30] sm:$0x1] }
  0x1f   : > { %s108_s5 = scalar_select %p107_p9, 1, 0 }
  0x20   : > { %s121_s8 = scalar_lea.vmem %s844_s1, %s117_s20  ;;  %p128_p11 = scmp.ne.s32.totalorder %s127_s21, 10003 }
  0x21   : > { %s109_s9 = scvt.s32.f32 %s108_s5  ;;  %v122_v3 = vld [vmem:[%s121_s8] sm:$0x1]  ;;  %s131_s15 = scalar_lea.vmem %s844_s1, %s127_s21 }
  0x22   : > { %s119_s10 = scalar_select %p118_p10, 1, 0  ;;  %v132_v4 = vld [vmem:[%s131_s15] sm:$0x1] }
  0x23   : > { %v112_v1 = vstv %s109_s9  ;;  %s129_s11 = scalar_select %p128_p11, 1, 0 }
  0x24   : > { %v113_v2 = vmul.f32 %v112_v1, %v111_v0  ;;  %s120_s12 = scvt.s32.f32 %s119_s10  ;;  %p138_p12 = scmp.ne.s32.totalorder %s580_s27, 10003 }
  0x25   : > { %s130_s17 = scvt.s32.f32 %s129_s11  ;;  %s141_s20 = scalar_lea.vmem %s844_s1, %s580_s27 }
  0x26   : > { %115 = vst.msk [vmem:[%s578_s26] sm:$0x1] %vm114_vm0, %v113_v2  ;;  %v123_v5 = vstv %s120_s12  ;;  %s147_s22 = sld [smem:[#allocation3 + %s146_s3]]  ;;  %v142_v9 = vld [vmem:[%s141_s20] sm:$0x1]  ;;  %s176_s27 = sadd.s32 7, %s569_s16 }
  0x27   : > { %v124_v6 = vmul.f32 %v123_v5, %v122_v3  ;;  %v133_v7 = vstv %s130_s17  ;;  %s139_s23 = scalar_select %p138_p12, 1, 0 }
  0x28   : > { %v134_v8 = vmul.f32 %v133_v7, %v132_v4  ;;  %s600_s21 = sld [smem:[#allocation3 + %s156_s4]]  ;;  %s196_s7 = sadd.s32 9, %s569_s16 }
  0x29   : > { %125 = vst.msk [vmem:[%s578_s26 + $0x1] sm:$0x1] %vm114_vm0, %v124_v6  ;;  %s140_s25 = scvt.s32.f32 %s139_s23  ;;  %s609_s30 = sld [smem:[#allocation3 + %s176_s27]] }
  0x2a   : > { %135 = vst.msk [vmem:[%s578_s26 + $0x2] sm:$0x1] %vm114_vm0, %v134_v8  ;;  %s611_s3 = sld [smem:[#allocation3 + %s186_s29]]  ;;  %s206_s8 = sadd.s32 10, %s569_s16 }
  0x2b   : > { %v143_v10 = vstv %s140_s25  ;;  %p168_p1 = scmp.ne.s32.totalorder %s167_s28, 10003  ;;  %s171_s20 = scalar_lea.vmem %s844_s1, %s167_s28 }
  0x2c   : > { %v144_v11 = vmul.f32 %v143_v10, %v142_v9  ;;  %p148_p13 = scmp.ne.s32.totalorder %s147_s22, 10003  ;;  %s151_s6 = scalar_lea.vmem %s844_s1, %s147_s22  ;;  %v172_v16 = vld [vmem:[%s171_s20] sm:$0x1] }
  0x2d   : > { %v152_v12 = vld [vmem:[%s151_s6] sm:$0x1]  ;;  %s169_s15 = scalar_select %p168_p1, 1, 0 }
  0x2e   : > { %145 = vst.msk [vmem:[%s578_s26 + $0x3] sm:$0x1] %vm114_vm0, %v144_v11  ;;  %s149_s9 = scalar_select %p148_p13, 1, 0 }
  0x2f   : > { %p158_p0 = scmp.ne.s32.totalorder %s600_s21, 10003  ;;  %s161_s12 = scalar_lea.vmem %s844_s1, %s600_s21 }
  0x30   : > { %s150_s13 = scvt.s32.f32 %s149_s9  ;;  %v162_v15 = vld [vmem:[%s161_s12] sm:$0x1]  ;;  %s170_s22 = scvt.s32.f32 %s169_s15 }
  0x31   : > { %s159_s0 = scalar_select %p158_p0, 1, 0 }
  0x32   : > { %v153_v13 = vstv %s150_s13  ;;  %p178_p2 = scmp.ne.s32.totalorder %s609_s30, 10003  ;;  %s181_s24 = scalar_lea.vmem %s844_s1, %s609_s30  ;;  %v173_v19 = vstv %s170_s22 }
  0x33   : > { %v154_v14 = vmul.f32 %v153_v13, %v152_v12  ;;  %s160_s17 = scvt.s32.f32 %s159_s0  ;;  %p188_p3 = scmp.ne.s32.totalorder %s611_s3, 10003  ;;  %v174_v20 = vmul.f32 %v173_v19, %v172_v16  ;;  %v182_v21 = vld [vmem:[%s181_s24] sm:$0x1] }
  0x34   : > { %s179_s25 = scalar_select %p178_p2, 1, 0 }
  0x35   : > { %155 = vst.msk [vmem:[%s578_s26 + $0x4] sm:$0x1] %vm114_vm0, %v154_v14  ;;  %v163_v17 = vstv %s160_s17  ;;  %s189_s28 = scalar_select %p188_p3, 1, 0  ;;  %175 = vst.msk [vmem:[%s578_s26 + $0x6] sm:$0x1] %vm114_vm0, %v174_v20 }
  0x36   : > { %v164_v18 = vmul.f32 %v163_v17, %v162_v15  ;;  %s180_s27 = scvt.s32.f32 %s179_s25  ;;  %s191_s5 = scalar_lea.vmem %s844_s1, %s611_s3 }
  0x37   : > { %s190_s30 = scvt.s32.f32 %s189_s28  ;;  %v192_v22 = vld [vmem:[%s191_s5] sm:$0x1]  ;;  %s197_s6 = sld [smem:[#allocation3 + %s196_s7]] }
  0x38   : > { %165 = vst.msk [vmem:[%s578_s26 + $0x5] sm:$0x1] %vm114_vm0, %v164_v18  ;;  %v183_v23 = vstv %s180_s27  ;;  %s207_s9 = sld [smem:[#allocation3 + %s206_s8]]  ;;  %s216_s10 = sadd.s32 11, %s569_s16 }
  0x39   : > { %v184_v24 = vmul.f32 %v183_v23, %v182_v21  ;;  %v193_v25 = vstv %s190_s30  ;;  %s649_s11 = sld [smem:[#allocation3 + %s216_s10]]  ;;  %s226_s12 = sadd.s32 12, %s569_s16 }
  0x3a   : > { %v194_v26 = vmul.f32 %v193_v25, %v192_v22  ;;  %s652_s3 = sld [smem:[#allocation3 + %s226_s12]]  ;;  %s236_s13 = sadd.s32 13, %s569_s16 }
  0x3b   : > { %185 = vst.msk [vmem:[%s578_s26 + $0x7] sm:$0x1] %vm114_vm0, %v184_v24  ;;  %s657_s0 = sld [smem:[#allocation3 + %s236_s13]]  ;;  %s246_s7 = sadd.s32 14, %s569_s16 }
  0x3c   : > { %195 = vst.msk [vmem:[%s578_s26 + $0x8] sm:$0x1] %vm114_vm0, %v194_v26  ;;  %s662_s8 = sld [smem:[#allocation3 + %s246_s7]]  ;;  %s256_s15 = sadd.s32 15, %s569_s16 }
  0x3d   : > { %p198_p4 = scmp.ne.s32.totalorder %s197_s6, 10003  ;;  %s201_s19 = scalar_lea.vmem %s844_s1, %s197_s6 }
  0x3e   : > { %p208_p5 = scmp.ne.s32.totalorder %s207_s9, 10003  ;;  %s211_s23 = scalar_lea.vmem %s844_s1, %s207_s9  ;;  %v202_v27 = vld [vmem:[%s201_s19] sm:$0x1] }
  0x3f   : > { %s199_s21 = scalar_select %p198_p4, 1, 0  ;;  %v212_v28 = vld [vmem:[%s211_s23] sm:$0x1] }
  0x40   : > { %s209_s24 = scalar_select %p208_p5, 1, 0 }
  0x41   : > { %s200_s25 = scvt.s32.f32 %s199_s21  ;;  %p218_p6 = scmp.ne.s32.totalorder %s649_s11, 10003 }
  0x42   : > { %s210_s28 = scvt.s32.f32 %s209_s24  ;;  %s221_s4 = scalar_lea.vmem %s844_s1, %s649_s11 }
  0x43   : > { %v203_v29 = vstv %s200_s25  ;;  %s219_s5 = scalar_select %p218_p6, 1, 0  ;;  %v222_v33 = vld [vmem:[%s221_s4] sm:$0x1] }
  0x44   : > { %v204_v30 = vmul.f32 %v203_v29, %v202_v27  ;;  %v213_v31 = vstv %s210_s28  ;;  %p228_p7 = scmp.ne.s32.totalorder %s652_s3, 10003  ;;  %s231_s9 = scalar_lea.vmem %s844_s1, %s652_s3 }
  0x45   : > { %v214_v32 = vmul.f32 %v213_v31, %v212_v28  ;;  %s220_s10 = scvt.s32.f32 %s219_s5  ;;  %p238_p8 = scmp.ne.s32.totalorder %s657_s0, 10003  ;;  %v232_v36 = vld [vmem:[%s231_s9] sm:$0x1] }
  0x46   : > { %205 = vst.msk [vmem:[%s578_s26 + $0x9] sm:$0x1] %vm114_vm0, %v204_v30  ;;  %s229_s11 = scalar_select %p228_p7, 1, 0 }
  0x47   : > { %215 = vst.msk [vmem:[%s578_s26 + $0xa] sm:$0x1] %vm114_vm0, %v214_v32  ;;  %v223_v34 = vstv %s220_s10  ;;  %s239_s12 = scalar_select %p238_p8, 1, 0 }
  0x48   : > { %v224_v35 = vmul.f32 %v223_v34, %v222_v33  ;;  %s230_s13 = scvt.s32.f32 %s229_s11  ;;  %s241_s17 = scalar_lea.vmem %s844_s1, %s657_s0 }
  0x49   : > { %s240_s18 = scvt.s32.f32 %s239_s12  ;;  %v242_v37 = vld [vmem:[%s241_s17] sm:$0x1]  ;;  %p248_p9 = scmp.ne.s32.totalorder %s662_s8, 10003 }
  0x4a   : > { %225 = vst.msk [vmem:[%s578_s26 + $0xb] sm:$0x1] %vm114_vm0, %v224_v35  ;;  %v233_v38 = vstv %s230_s13  ;;  %s251_s22 = scalar_lea.vmem %s844_s1, %s662_s8  ;;  %s257_s23 = sld [smem:[#allocation3 + %s256_s15]] }
  0x4b   : > { %v234_v39 = vmul.f32 %v233_v38, %v232_v36  ;;  %v243_v40 = vstv %s240_s18  ;;  %s249_s21 = scalar_select %p248_p9, 1, 0  ;;  %v252_v42 = vld [vmem:[%s251_s22] sm:$0x1] }
  0x4c   : > { %v244_v41 = vmul.f32 %v243_v40, %v242_v37  ;;  %s266_s0 = sadd.s32 16, %s569_s16  ;;  %s276_s24 = sadd.s32 17, %s569_s16 }
  0x4d   : > { %235 = vst.msk [vmem:[%s578_s26 + $0xc] sm:$0x1] %vm114_vm0, %v234_v39  ;;  %s250_s25 = scvt.s32.f32 %s249_s21  ;;  %s267_s28 = sld [smem:[#allocation3 + %s266_s0]] }
  0x4e   : > { %245 = vst.msk [vmem:[%s578_s26 + $0xd] sm:$0x1] %vm114_vm0, %v244_v41  ;;  %s277_s27 = sld [smem:[#allocation3 + %s276_s24]]  ;;  %s286_s8 = sadd.s32 18, %s569_s16 }
  0x4f   : > { %v253_v43 = vstv %s250_s25  ;;  %s706_s15 = sld [smem:[#allocation3 + %s286_s8]]  ;;  %s296_s29 = sadd.s32 19, %s569_s16 }
  0x50   : > { %v254_v44 = vmul.f32 %v253_v43, %v252_v42  ;;  %p258_p10 = scmp.ne.s32.totalorder %s257_s23, 10003  ;;  %s261_s30 = scalar_lea.vmem %s844_s1, %s257_s23 }
  0x51   : > { %s712_s6 = sld [smem:[#allocation3 + %s296_s29]]  ;;  %s306_s9 = sadd.s32 20, %s569_s16  ;;  %v262_v45 = vld [vmem:[%s261_s30] sm:$0x1] }
  0x52   : > { %255 = vst.msk [vmem:[%s578_s26 + $0xe] sm:$0x1] %vm114_vm0, %v254_v44  ;;  %s259_s10 = scalar_select %p258_p10, 1, 0 }
  0x53   : > { %p268_p11 = scmp.ne.s32.totalorder %s267_s28, 10003  ;;  %s271_s13 = scalar_lea.vmem %s844_s1, %s267_s28 }
  0x54   : > { %s260_s3 = scvt.s32.f32 %s259_s10  ;;  %p278_p12 = scmp.ne.s32.totalorder %s277_s27, 10003  ;;  %v272_v48 = vld [vmem:[%s271_s13] sm:$0x1] }
  0x55   : > { %s269_s7 = scalar_select %p268_p11, 1, 0 }
  0x56   : > { %v263_v46 = vstv %s260_s3  ;;  %s279_s17 = scalar_select %p278_p12, 1, 0 }
  0x57   : > { %v264_v47 = vmul.f32 %v263_v46, %v262_v45  ;;  %s270_s18 = scvt.s32.f32 %s269_s7  ;;  %s281_s22 = scalar_lea.vmem %s844_s1, %s277_s27 }
  0x58   : > { %s280_s23 = scvt.s32.f32 %s279_s17  ;;  %v282_v49 = vld [vmem:[%s281_s22] sm:$0x1]  ;;  %p288_p13 = scmp.ne.s32.totalorder %s706_s15, 10003 }
  0x59   : > { %265 = vst.msk [vmem:[%s578_s26 + $0xf] sm:$0x1] %vm114_vm0, %v264_v47  ;;  %v273_v50 = vstv %s270_s18  ;;  %s291_s24 = scalar_lea.vmem %s844_s1, %s706_s15  ;;  %p298_p0 = scmp.ne.s32.totalorder %s712_s6, 10003 }
  0x5a   : > { %v274_v51 = vmul.f32 %v273_v50, %v272_v48  ;;  %v283_v52 = vstv %s280_s23  ;;  %s289_s25 = scalar_select %p288_p13, 1, 0  ;;  %v292_v54 = vld [vmem:[%s291_s24] sm:$0x1] }
  0x5b   : > { %v284_v53 = vmul.f32 %v283_v52, %v282_v49  ;;  %s299_s28 = scalar_select %p298_p0, 1, 0 }
  0x5c   : > { %275 = vst.msk [vmem:[%s578_s26 + $0x10] sm:$0x1] %vm114_vm0, %v274_v51  ;;  %s290_s27 = scvt.s32.f32 %s289_s25  ;;  %s301_s4 = scalar_lea.vmem %s844_s1, %s712_s6 }
  0x5d   : > { %285 = vst.msk [vmem:[%s578_s26 + $0x11] sm:$0x1] %vm114_vm0, %v284_v53  ;;  %s300_s15 = scvt.s32.f32 %s299_s28  ;;  %v302_v55 = vld [vmem:[%s301_s4] sm:$0x1]  ;;  %s307_s5 = sld [smem:[#allocation3 + %s306_s9]] }
  0x5e   : > { %v293_v56 = vstv %s290_s27  ;;  %s316_s30 = sadd.s32 21, %s569_s16  ;;  %s326_s10 = sadd.s32 22, %s569_s16 }
  0x5f   : > { %v294_v57 = vmul.f32 %v293_v56, %v292_v54  ;;  %v303_v58 = vstv %s300_s15  ;;  %s317_s11 = sld [smem:[#allocation3 + %s316_s30]]  ;;  %s336_s13 = sadd.s32 23, %s569_s16 }
  0x60   : > { %s327_s12 = sld [smem:[#allocation3 + %s326_s10]]  ;;  %v304_v59 = vmul.f32 %v303_v58, %v302_v55  ;;  %s346_s3 = sadd.s32 24, %s569_s16 }
  0x61   : > { %295 = vst.msk [vmem:[%s578_s26 + $0x12] sm:$0x1] %vm114_vm0, %v294_v57  ;;  %s747_s6 = sld [smem:[#allocation3 + %s336_s13]]  ;;  %s356_s9 = sadd.s32 25, %s569_s16 }
  0x62   : > { %s749_s7 = sld [smem:[#allocation3 + %s346_s3]]  ;;  %305 = vst.msk [vmem:[%s578_s26 + $0x13] sm:$0x1] %vm114_vm0, %v304_v59  ;;  %s366_s17 = sadd.s32 26, %s569_s16 }
  0x63   : > { %p308_p1 = scmp.ne.s32.totalorder %s307_s5, 10003  ;;  %s311_s20 = scalar_lea.vmem %s844_s1, %s307_s5 }
  0x64   : > { %s758_s22 = sld [smem:[#allocation3 + %s356_s9]]  ;;  %v312_v60 = vld [vmem:[%s311_s20] sm:$0x1]  ;;  %s386_s15 = sadd.s32 28, %s569_s16 }
  0x65   : > { %s760_s23 = sld [smem:[#allocation3 + %s366_s17]]  ;;  %p318_p2 = scmp.ne.s32.totalorder %s317_s11, 10003 }
  0x66   : > { %s309_s21 = scalar_select %p308_p1, 1, 0 }
  0x67   : > { %s321_s25 = scalar_lea.vmem %s844_s1, %s317_s11  ;;  %p328_p3 = scmp.ne.s32.totalorder %s327_s12, 10003 }
  0x68   : > { %s310_s28 = scvt.s32.f32 %s309_s21  ;;  %v322_v63 = vld [vmem:[%s321_s25] sm:$0x1]  ;;  %s331_s5 = scalar_lea.vmem %s844_s1, %s327_s12 }
  0x69   : > { %s319_s27 = scalar_select %p318_p2, 1, 0  ;;  %v332_v0 = vld [vmem:[%s331_s5] sm:$0x1] }
  0x6a   : > { %v313_v61 = vstv %s310_s28  ;;  %s329_s8 = scalar_select %p328_p3, 1, 0 }
  0x6b   : > { %v314_v62 = vmul.f32 %v313_v61, %v312_v60  ;;  %s320_s29 = scvt.s32.f32 %s319_s27  ;;  %p338_p4 = scmp.ne.s32.totalorder %s747_s6, 10003 }
  0x6c   : > { %s330_s30 = scvt.s32.f32 %s329_s8  ;;  %s341_s13 = scalar_lea.vmem %s844_s1, %s747_s6 }
  0x6d   : > { %315 = vst.msk [vmem:[%s578_s26 + $0x14] sm:$0x1] %vm114_vm0, %v314_v62  ;;  %v323_v1 = vstv %s320_s29  ;;  %p348_p5 = scmp.ne.s32.totalorder %s749_s7, 10003  ;;  %v342_v5 = vld [vmem:[%s341_s13] sm:$0x1]  ;;  %s351_s19 = scalar_lea.vmem %s844_s1, %s749_s7 }
  0x6e   : > { %v324_v2 = vmul.f32 %v323_v1, %v322_v63  ;;  %v333_v3 = vstv %s330_s30  ;;  %s339_s3 = scalar_select %p338_p4, 1, 0  ;;  %v352_v6 = vld [vmem:[%s351_s19] sm:$0x1] }
  0x6f   : > { %v334_v4 = vmul.f32 %v333_v3, %v332_v0  ;;  %s349_s12 = scalar_select %p348_p5, 1, 0 }
  0x70   : > { %325 = vst.msk [vmem:[%s578_s26 + $0x15] sm:$0x1] %vm114_vm0, %v324_v2  ;;  %s340_s9 = scvt.s32.f32 %s339_s3  ;;  %p358_p6 = scmp.ne.s32.totalorder %s758_s22, 10003 }
  0x71   : > { %335 = vst.msk [vmem:[%s578_s26 + $0x16] sm:$0x1] %vm114_vm0, %v334_v4  ;;  %s350_s6 = scvt.s32.f32 %s349_s12  ;;  %s361_s0 = scalar_lea.vmem %s844_s1, %s758_s22 }
  0x72   : > { %v343_v7 = vstv %s340_s9  ;;  %p368_p7 = scmp.ne.s32.totalorder %s760_s23, 10003  ;;  %v362_v11 = vld [vmem:[%s361_s0] sm:$0x1]  ;;  %s371_s8 = scalar_lea.vmem %s844_s1, %s760_s23 }
  0x73   : > { %v344_v8 = vmul.f32 %v343_v7, %v342_v5  ;;  %v353_v9 = vstv %s350_s6  ;;  %s359_s24 = scalar_select %p358_p6, 1, 0  ;;  %v372_v12 = vld [vmem:[%s371_s8] sm:$0x1] }
  0x74   : > { %v354_v10 = vmul.f32 %v353_v9, %v352_v6  ;;  %s369_s7 = scalar_select %p368_p7, 1, 0 }
  0x75   : > { %345 = vst.msk [vmem:[%s578_s26 + $0x17] sm:$0x1] %vm114_vm0, %v344_v8  ;;  %s360_s25 = scvt.s32.f32 %s359_s24  ;;  %s376_s29 = sadd.s32 27, %s569_s16 }
  0x76   : > { %355 = vst.msk [vmem:[%s578_s26 + $0x18] sm:$0x1] %vm114_vm0, %v354_v10  ;;  %s370_s22 = scvt.s32.f32 %s369_s7  ;;  %s377_s4 = sld [smem:[#allocation3 + %s376_s29]] }
  0x77   : > { %v363_v13 = vstv %s360_s25  ;;  %s387_s5 = sld [smem:[#allocation3 + %s386_s15]]  ;;  %s396_s30 = sadd.s32 29, %s569_s16 }
  0x78   : > { %v364_v14 = vmul.f32 %v363_v13, %v362_v11  ;;  %v373_v15 = vstv %s370_s22  ;;  %s397_s10 = sld [smem:[#allocation3 + %s396_s30]]  ;;  %s406_s11 = sadd.s32 30, %s569_s16 }
  0x79   : > { %v374_v16 = vmul.f32 %v373_v15, %v372_v12  ;;  %s416_s23 = sadd.s32 31, %s569_s16  ;;  %s807_s13 = sld [smem:[#allocation3 + %s406_s11]] }
  0x7a   : > { %365 = vst.msk [vmem:[%s578_s26 + $0x19] sm:$0x1] %vm114_vm0, %v364_v14  ;;  %s809_s3 = sld [smem:[#allocation3 + %s416_s23]] }
  0x7b   : > { %375 = vst.msk [vmem:[%s578_s26 + $0x1a] sm:$0x1] %vm114_vm0, %v374_v16 }
  0x7c   : > { %p378_p8 = scmp.ne.s32.totalorder %s377_s4, 10003  ;;  %s381_s17 = scalar_lea.vmem %s844_s1, %s377_s4 }
  0x7d   : > { %p388_p9 = scmp.ne.s32.totalorder %s387_s5, 10003  ;;  %s391_s6 = scalar_lea.vmem %s844_s1, %s387_s5  ;;  %v382_v17 = vld [vmem:[%s381_s17] sm:$0x1] }
  0x7e   : > { %s379_s20 = scalar_select %p378_p8, 1, 0  ;;  %v392_v18 = vld [vmem:[%s391_s6] sm:$0x1] }
  0x7f   : > { %s389_s16 = scalar_select %p388_p9, 1, 0 }
  0x80   : > { %s380_s21 = scvt.s32.f32 %s379_s20  ;;  %p398_p10 = scmp.ne.s32.totalorder %s397_s10, 10003 }
  0x81   : > { %s390_s0 = scvt.s32.f32 %s389_s16  ;;  %s401_s25 = scalar_lea.vmem %s844_s1, %s397_s10 }
  0x82   : > { %v383_v19 = vstv %s380_s21  ;;  %s399_s28 = scalar_select %p398_p10, 1, 0  ;;  %v402_v23 = vld [vmem:[%s401_s25] sm:$0x1] }
  0x83   : > { %v384_v20 = vmul.f32 %v383_v19, %v382_v17  ;;  %v393_v21 = vstv %s390_s0  ;;  %p408_p11 = scmp.ne.s32.totalorder %s807_s13, 10003  ;;  %s411_s22 = scalar_lea.vmem %s844_s1, %s807_s13 }
  0x84   : > { %v394_v22 = vmul.f32 %v393_v21, %v392_v18  ;;  %s400_s29 = scvt.s32.f32 %s399_s28  ;;  %p418_p12 = scmp.ne.s32.totalorder %s809_s3, 10003  ;;  %v412_v26 = vld [vmem:[%s411_s22] sm:$0x1] }
  0x85   : > { %385 = vst.msk [vmem:[%s578_s26 + $0x1b] sm:$0x1] %vm114_vm0, %v384_v20  ;;  %s409_s4 = scalar_select %p408_p11, 1, 0 }
  0x86   : > { %395 = vst.msk [vmem:[%s578_s26 + $0x1c] sm:$0x1] %vm114_vm0, %v394_v22  ;;  %v403_v24 = vstv %s400_s29  ;;  %s419_s15 = scalar_select %p418_p12, 1, 0 }
  0x87   : > { %v404_v25 = vmul.f32 %v403_v24, %v402_v23  ;;  %s410_s5 = scvt.s32.f32 %s409_s4  ;;  %s421_s11 = scalar_lea.vmem %s844_s1, %s809_s3 }
  0x88   : > { %s420_s23 = scvt.s32.f32 %s419_s15  ;;  %v422_v27 = vld [vmem:[%s421_s11] sm:$0x1] }
  0x89   : > { %405 = vst.msk [vmem:[%s578_s26 + $0x1d] sm:$0x1] %vm114_vm0, %v404_v25  ;;  %v413_v28 = vstv %s410_s5 }
  0x8a   : > { %v414_v29 = vmul.f32 %v413_v28, %v412_v26  ;;  %v423_v30 = vstv %s420_s23 }
  0x8b   : > { %v424_v31 = vmul.f32 %v423_v30, %v422_v27 }
  0x8c   : > { %415 = vst.msk [vmem:[%s578_s26 + $0x1e] sm:$0x1] %vm114_vm0, %v414_v29 }
  0x8d   : > { %425 = vst.msk [vmem:[%s578_s26 + $0x1f] sm:$0x1] %vm114_vm0, %v424_v31 }
  0x8e PF: > { %s18_s14 = sadd.s32 1, %s540_s14  }
  0x8f   : > { %p15_p13 = scmp.ge.s32.totalorder %s18_s14, 4  }
  0x91   :  { %17 = sbr.rel (!%p15_p13) target bundleno = 16 (0x10), region = 83 }

</bundles_post_ra>
